<compile_context>
chip_gen: v7x
topology: tpu7x:2x2x1
jax: 0.10.0
libtpu: 0.0.40
codegen_flags: <defaults>
</compile_context>

<pallas_src>
import jax
import jax.numpy as jnp
from jax.experimental import pallas as pl
from jax.experimental.pallas import tpu as pltpu


def _round_up(x, m):
    return (x + m - 1) // m * m


# --------------------------------------------------------------------------------------
# Kernel body
# --------------------------------------------------------------------------------------
def _gating_kernel(x_ref, y_ref,
                   wy_ref, by_ref,      # fused (Wr|Wz|Wg)^T [Dp,3Dp], (br | bz-bg | bgw) [1,3Dp]
                   ux_ref, bx_ref,      # fused (Ur|Uz)^T    [Dp,2Dp], (bur | buz)       [1,2Dp]
                   ug_ref, bug_ref,     # Ug^T [Dp,Dp], bug [1,Dp]
                   o_ref):
    Dp = x_ref.shape[1]

    x_raw = x_ref[...]
    x = x_raw.astype(jnp.float32)                      # f32 for the gate math / blend
    x_bf = x_raw.astype(jnp.bfloat16)
    y_bf = y_ref[...].astype(jnp.bfloat16)

    # Two fused MXU matmuls: bf16 inputs, f32 accumulation.
    s_y = jnp.dot(y_bf, wy_ref[...], preferred_element_type=jnp.float32) + by_ref[...]
    s_x = jnp.dot(x_bf, ux_ref[...], preferred_element_type=jnp.float32) + bx_ref[...]

    # One sigmoid over the contiguous first 2*Dp lanes gives r and z in a single stream.
    gates = jax.nn.sigmoid(s_y[:, :2 * Dp] + s_x)      # bg already folded into the z bias
    r = gates[:, :Dp]
    z = gates[:, Dp:]

    rx = (r * x).astype(jnp.bfloat16)
    h = jnp.tanh(s_y[:, 2 * Dp:]
                 + jnp.dot(rx, ug_ref[...], preferred_element_type=jnp.float32)
                 + bug_ref[...])

    # g = (1 - z) * x + z * h  ==  x + z * (h - x)
    o_ref[...] = (x + z * (h - x)).astype(o_ref.dtype)


# --------------------------------------------------------------------------------------
# One-time weight packing
# --------------------------------------------------------------------------------------
def pack_gating_params(params, d_input, bg=0.1):
    """Transpose, fuse, pad D->multiple of 128, cast weights to bf16 (done ONCE).

    params: dict name -> (W, b) with W in PyTorch (out, in) layout so that Linear(v) = v @ W.T + b.
    """
    D = d_input
    Dp = _round_up(max(D, 128), 128)

    def pad_w(W):                       # (D,D) (out,in) -> transposed + zero-padded (Dp,Dp)
        return jnp.pad(W.T.astype(jnp.float32), ((0, Dp - D), (0, Dp - D)))

    def pad_b(b, shift=0.0):            # (D,) -> (1, Dp); pad lanes are exactly zero
        return jnp.pad(b.astype(jnp.float32) + shift, (0, Dp - D)).reshape(1, Dp)

    Wr, br = params["Wr"]; Ur, bur = params["Ur"]
    Wz, bz = params["Wz"]; Uz, buz = params["Uz"]
    Wg, bgw = params["Wg"]; Ug, bug = params["Ug"]

    W_y = jnp.concatenate([pad_w(Wr), pad_w(Wz), pad_w(Wg)], axis=1).astype(jnp.bfloat16)  # (Dp,3Dp)
    b_y = jnp.concatenate([pad_b(br), pad_b(bz, -bg), pad_b(bgw)], axis=1)                 # (1,3Dp) f32
    U_x = jnp.concatenate([pad_w(Ur), pad_w(Uz)], axis=1).astype(jnp.bfloat16)             # (Dp,2Dp)
    b_x = jnp.concatenate([pad_b(bur), pad_b(buz)], axis=1)                                # (1,2Dp) f32
    U_g = pad_w(Ug).astype(jnp.bfloat16)                                                   # (Dp,Dp)
    b_g = pad_b(bug)                                                                       # (1,Dp)  f32

    return {"W_y": W_y, "b_y": b_y, "U_x": U_x, "b_x": b_x,
            "U_g": U_g, "b_g": b_g, "d_pad": Dp, "d_input": D}


# --------------------------------------------------------------------------------------
# Wrapper
# --------------------------------------------------------------------------------------
def gating_mechanism(x, y, packed, *, tm=None, out_dtype=None):
    """x, y: [M, D] (f32 or bf16).  packed: output of pack_gating_params.  Returns [M, D]."""
    M, D = x.shape
    Dp = packed["d_pad"]
    assert D == packed["d_input"]
    out_dtype = x.dtype if out_dtype is None else out_dtype

    # --- VMEM capacity (per TensorCore) -> ceiling with headroom for compiler scratch ---
    try:
        vmem_cap = int(pltpu.get_tpu_info().vmem_capacity_bytes)
    except Exception:
        vmem_cap = 64 * 1024 * 1024                 # conservative (v7x-sized) fallback
    vmem_ceiling = int(vmem_cap * 0.75)             # e.g. ~48 MiB on v7x, ~96 MiB on v5e/v6e

    # --- Row tile selection ---
    if tm is None:
        if vmem_cap >= 96 * 1024 * 1024:            # 128-MiB parts (v5e / v6e): bigger tiles
            tm = 512
        else:                                       # 64-MiB parts (v7x): keep tiles modest
            tm = 128 if Dp >= 1024 else 256
    tm = max(8, min(int(tm), _round_up(M, 8)))
    # Ensure >= 2 grid steps when possible so "parallel" can shard rows across 2 TCs (v7x).
    if pl.cdiv(M, tm) < 2 and M > 8:
        tm = _round_up(pl.cdiv(M, 2), 8)

    act_bytes = jnp.dtype(x.dtype).itemsize
    out_bytes = jnp.dtype(out_dtype).itemsize

    def vmem_need(t):
        bytes_w = 2 * 6 * Dp * Dp                               # bf16 fused weights, single-buffered
        bytes_b = 4 * 6 * Dp                                    # f32 biases, single-buffered
        bytes_act = 2 * t * Dp * (2 * act_bytes + out_bytes)    # x, y, out tiles, double-buffered
        bytes_tmp = 4 * t * (3 * Dp + 2 * Dp)                   # f32 s_y, s_x
        return int(1.25 * (bytes_w + bytes_b + bytes_act + bytes_tmp))   # +25% headroom

    while vmem_need(tm) > vmem_ceiling and tm > 128:
        tm = max(128, tm // 2)
    vmem_limit = int(min(max(vmem_need(tm), 32 * 1024 * 1024), vmem_ceiling))

    # --- Lane padding only when D is not a multiple of 128 (no row padding ever) ---
    if Dp == D:
        x_in, y_in = x, y
    else:
        x_in = jnp.pad(x, ((0, 0), (0, Dp - D)))
        y_in = jnp.pad(y, ((0, 0), (0, Dp - D)))

    row_spec = pl.BlockSpec((tm, Dp), lambda i: (i, 0))
    # Constant weight/bias blocks: index_map is constant -> single-buffered (fetched once).
    wy_spec = pl.BlockSpec((Dp, 3 * Dp), lambda i: (0, 0), pipeline_mode=pl.Buffered(1))
    by_spec = pl.BlockSpec((1, 3 * Dp), lambda i: (0, 0), pipeline_mode=pl.Buffered(1))
    ux_spec = pl.BlockSpec((Dp, 2 * Dp), lambda i: (0, 0), pipeline_mode=pl.Buffered(1))
    bx_spec = pl.BlockSpec((1, 2 * Dp), lambda i: (0, 0), pipeline_mode=pl.Buffered(1))
    ug_spec = pl.BlockSpec((Dp, Dp), lambda i: (0, 0), pipeline_mode=pl.Buffered(1))
    bg_spec = pl.BlockSpec((1, Dp), lambda i: (0, 0), pipeline_mode=pl.Buffered(1))

    out = pl.pallas_call(
        _gating_kernel,
        out_shape=jax.ShapeDtypeStruct((M, Dp), out_dtype),
        grid_spec=pltpu.PrefetchScalarGridSpec(
            num_scalar_prefetch=0,
            grid=(pl.cdiv(M, tm),),                 # ragged last block handled by Pallas
            in_specs=[
                row_spec, row_spec,                 # x, y
                wy_spec, by_spec,                   # fused W_y, b_y
                ux_spec, bx_spec,                   # fused U_x, b_x
                ug_spec, bg_spec,                   # U_g, b_g
            ],
            out_specs=row_spec,
        ),
        compiler_params=pltpu.CompilerParams(
            dimension_semantics=("parallel",),
            vmem_limit_bytes=vmem_limit,
        ),
    )(x_in, y_in,
      packed["W_y"], packed["b_y"],
      packed["U_x"], packed["b_x"],
      packed["U_g"], packed["b_g"])

    return out if Dp == D else out[:, :D]


# --------------------------------------------------------------------------------------
# Reference + init
# --------------------------------------------------------------------------------------
def init_params(key, d_input):
    """Deterministic init mirroring torch.nn.Linear default (uniform +-1/sqrt(d))."""
    names = ["Wr", "Ur", "Wz", "Uz", "Wg", "Ug"]
    params = {}
    bound = 1.0 / float(jnp.sqrt(d_input))
    for name in names:
        key, kw, kb = jax.random.split(key, 3)
        W = jax.random.uniform(kw, (d_input, d_input), jnp.float32, -bound, bound)
        b = jax.random.uniform(kb, (d_input,), jnp.float32, -bound, bound)
        params[name] = (W, b)
    return params


def gating_reference(x, y, params, bg=0.1, matmul_dtype=jnp.float32):
    """Matches the PyTorch GatingMechanism forward; matmul_dtype lets us build a
    bf16-matmul reference (same precision as the kernel) for a tight comparison."""
    def lin(v, name):
        W, b = params[name]
        return jnp.dot(v.astype(matmul_dtype), W.T.astype(matmul_dtype),
                       preferred_element_type=jnp.float32) + b
    r = jax.nn.sigmoid(lin(y, "Wr") + lin(x, "Ur"))
    z = jax.nn.sigmoid(lin(y, "Wz") + lin(x, "Uz") - bg)
    h = jnp.tanh(lin(y, "Wg") + lin(r * x, "Ug"))
    return (1.0 - z) * x + z * h


# --------------------------------------------------------------------------------------
# Demo / self-test
# --------------------------------------------------------------------------------------
if __name__ == "__main__":
    key = jax.random.PRNGKey(0)
    batch, seq, d_input = 2, 8, 32
    bg = 0.1

    key, kx, ky, kp = jax.random.split(key, 4)
    x = jax.random.normal(kx, (batch, seq, d_input), jnp.float32)
    y = jax.random.normal(ky, (batch, seq, d_input), jnp.float32)
    params = init_params(kp, d_input)

    # Pack / transpose / fuse / bf16-cast weights ONCE (reused across calls).
    packed = pack_gating_params(params, d_input, bg=bg)

    # Flatten leading dims -> [M, D] for the kernel, reshape back afterwards.
    M = batch * seq
    x2 = x.reshape(M, d_input)
    y2 = y.reshape(M, d_input)

    out = gating_mechanism(x2, y2, packed).reshape(batch, seq, d_input)
    out = jax.block_until_ready(out)

    # bf16-matmul reference (same matmul precision as the kernel): tight tolerance.
    ref_bf = gating_reference(x2, y2, params, bg=bg,
                              matmul_dtype=jnp.bfloat16).reshape(batch, seq, d_input)
    ref_bf = jax.block_until_ready(ref_bf)
    assert jnp.allclose(out, ref_bf, atol=5e-3, rtol=5e-3), "mismatch vs bf16-matmul reference"

    # Full-f32 reference: loose tolerance accounts for bf16 matmul rounding.
    ref_f32 = gating_reference(x2, y2, params, bg=bg).reshape(batch, seq, d_input)
    ref_f32 = jax.block_until_ready(ref_f32)
    assert jnp.allclose(out, ref_f32, atol=2e-2, rtol=2e-2), "mismatch vs f32 reference"

    print("KERNEL_OK")
</pallas_src>

<mosaic_0001>
module attributes {stable_mosaic.version = 11 : i64} {
  func.func @_gating_kernel(%arg0: i32, %arg1: memref<8x128xf32, #tpu.memory_space<vmem>>, %arg2: memref<8x128xf32, #tpu.memory_space<vmem>>, %arg3: memref<128x384xbf16, #tpu.memory_space<vmem>>, %arg4: memref<1x384xf32, #tpu.memory_space<vmem>>, %arg5: memref<128x256xbf16, #tpu.memory_space<vmem>>, %arg6: memref<1x256xf32, #tpu.memory_space<vmem>>, %arg7: memref<128x128xbf16, #tpu.memory_space<vmem>>, %arg8: memref<1x128xf32, #tpu.memory_space<vmem>>, %arg9: memref<8x128xf32, #tpu.memory_space<vmem>>) attributes {dimension_semantics = [#tpu.dimension_semantics<parallel>], iteration_bounds = array<i64: 2>, scalar_prefetch = 0 : i64, scratch_operands = 0 : i64, tpu.core_type = #tpu.core_type<tc>, window_params = [{transform_indices = @transform_0, window_bounds = array<i64: 8, 128>}, {transform_indices = @transform_1, window_bounds = array<i64: 8, 128>}, {pipeline_mode = #tpu.pipeline_mode<synchronous>, transform_indices = @transform_2, window_bounds = array<i64: 128, 384>}, {pipeline_mode = #tpu.pipeline_mode<synchronous>, transform_indices = @transform_3, window_bounds = array<i64: 1, 384>}, {pipeline_mode = #tpu.pipeline_mode<synchronous>, transform_indices = @transform_4, window_bounds = array<i64: 128, 256>}, {pipeline_mode = #tpu.pipeline_mode<synchronous>, transform_indices = @transform_5, window_bounds = array<i64: 1, 256>}, {pipeline_mode = #tpu.pipeline_mode<synchronous>, transform_indices = @transform_6, window_bounds = array<i64: 128, 128>}, {pipeline_mode = #tpu.pipeline_mode<synchronous>, transform_indices = @transform_7, window_bounds = array<i64: 1, 128>}, {transform_indices = @transform_8, window_bounds = array<i64: 8, 128>}]} {
    %c0 = arith.constant 0 : index
    %c0_0 = arith.constant 0 : index
    %0 = vector.load %arg1[%c0, %c0_0] : memref<8x128xf32, #tpu.memory_space<vmem>>, vector<8x128xf32>
    %1 = arith.truncf %0 : vector<8x128xf32> to vector<8x128xbf16>
    %c0_1 = arith.constant 0 : index
    %c0_2 = arith.constant 0 : index
    %2 = vector.load %arg2[%c0_1, %c0_2] : memref<8x128xf32, #tpu.memory_space<vmem>>, vector<8x128xf32>
    %3 = arith.truncf %2 : vector<8x128xf32> to vector<8x128xbf16>
    %c0_3 = arith.constant 0 : index
    %c0_4 = arith.constant 0 : index
    %4 = vector.load %arg3[%c0_3, %c0_4] : memref<128x384xbf16, #tpu.memory_space<vmem>>, vector<128x384xbf16>
    %cst = arith.constant dense<0.000000e+00> : vector<8x384xf32>
    %5 = tpu.matmul %3, %4, %cst {dimension_numbers = #tpu.dot_dimension_numbers<[1], [0], [0], [1], [0, 0, 1, 1], [], []>} : vector<8x128xbf16>, vector<128x384xbf16>, vector<8x384xf32> -> vector<8x384xf32>
    %c0_5 = arith.constant 0 : index
    %c0_6 = arith.constant 0 : index
    %6 = vector.load %arg4[%c0_5, %c0_6] : memref<1x384xf32, #tpu.memory_space<vmem>>, vector<1x384xf32>
    %7 = vector.broadcast %6 : vector<1x384xf32> to vector<8x384xf32>
    %8 = arith.addf %5, %7 : vector<8x384xf32>
    %c0_7 = arith.constant 0 : index
    %c0_8 = arith.constant 0 : index
    %9 = vector.load %arg5[%c0_7, %c0_8] : memref<128x256xbf16, #tpu.memory_space<vmem>>, vector<128x256xbf16>
    %cst_9 = arith.constant dense<0.000000e+00> : vector<8x256xf32>
    %10 = tpu.matmul %1, %9, %cst_9 {dimension_numbers = #tpu.dot_dimension_numbers<[1], [0], [0], [1], [0, 0, 1, 1], [], []>} : vector<8x128xbf16>, vector<128x256xbf16>, vector<8x256xf32> -> vector<8x256xf32>
    %c0_10 = arith.constant 0 : index
    %c0_11 = arith.constant 0 : index
    %11 = vector.load %arg6[%c0_10, %c0_11] : memref<1x256xf32, #tpu.memory_space<vmem>>, vector<1x256xf32>
    %12 = vector.broadcast %11 : vector<1x256xf32> to vector<8x256xf32>
    %13 = arith.addf %10, %12 : vector<8x256xf32>
    %14 = vector.extract_strided_slice %8 {offsets = [0, 0], sizes = [8, 256], strides = [1, 1]} : vector<8x384xf32> to vector<8x256xf32>
    %15 = arith.addf %14, %13 : vector<8x256xf32>
    %16 = arith.negf %15 : vector<8x256xf32>
    %17 = math.exp %16 : vector<8x256xf32>
    %cst_12 = arith.constant 1.000000e+00 : f32
    %18 = vector.broadcast %cst_12 : f32 to vector<8x256xf32>
    %19 = arith.addf %18, %17 : vector<8x256xf32>
    %20 = arith.divf %18, %19 : vector<8x256xf32>
    %21 = vector.extract_strided_slice %20 {offsets = [0, 0], sizes = [8, 128], strides = [1, 1]} : vector<8x256xf32> to vector<8x128xf32>
    %22 = vector.extract_strided_slice %20 {offsets = [0, 128], sizes = [8, 128], strides = [1, 1]} : vector<8x256xf32> to vector<8x128xf32>
    %23 = arith.mulf %21, %0 : vector<8x128xf32>
    %24 = arith.truncf %23 : vector<8x128xf32> to vector<8x128xbf16>
    %25 = vector.extract_strided_slice %8 {offsets = [0, 256], sizes = [8, 128], strides = [1, 1]} : vector<8x384xf32> to vector<8x128xf32>
    %c0_13 = arith.constant 0 : index
    %c0_14 = arith.constant 0 : index
    %26 = vector.load %arg7[%c0_13, %c0_14] : memref<128x128xbf16, #tpu.memory_space<vmem>>, vector<128x128xbf16>
    %cst_15 = arith.constant dense<0.000000e+00> : vector<8x128xf32>
    %27 = tpu.matmul %24, %26, %cst_15 {dimension_numbers = #tpu.dot_dimension_numbers<[1], [0], [0], [1], [0, 0, 1, 1], [], []>} : vector<8x128xbf16>, vector<128x128xbf16>, vector<8x128xf32> -> vector<8x128xf32>
    %28 = arith.addf %25, %27 : vector<8x128xf32>
    %c0_16 = arith.constant 0 : index
    %c0_17 = arith.constant 0 : index
    %29 = vector.load %arg8[%c0_16, %c0_17] : memref<1x128xf32, #tpu.memory_space<vmem>>, vector<1x128xf32>
    %30 = vector.broadcast %29 : vector<1x128xf32> to vector<8x128xf32>
    %31 = arith.addf %28, %30 : vector<8x128xf32>
    %32 = math.tanh %31 : vector<8x128xf32>
    %33 = arith.subf %32, %0 : vector<8x128xf32>
    %34 = arith.mulf %22, %33 : vector<8x128xf32>
    %35 = arith.addf %0, %34 : vector<8x128xf32>
    %c0_18 = arith.constant 0 : index
    %c0_19 = arith.constant 0 : index
    %36 = vector.load %arg9[%c0_18, %c0_19] : memref<8x128xf32, #tpu.memory_space<vmem>>, vector<8x128xf32>
    tpu.vector_store %arg9[%c0_18, %c0_19], %35 {strides = array<i32>} : memref<8x128xf32, #tpu.memory_space<vmem>>, vector<8x128xf32>,
    return
  }
  func.func @transform_0(%arg0: i32) -> (i32, i32) {
    %c0_i32 = arith.constant 0 : i32
    %c0_i32_0 = arith.constant 0 : i32
    return %arg0, %c0_i32 : i32, i32
  }
  func.func @transform_1(%arg0: i32) -> (i32, i32) {
    %c0_i32 = arith.constant 0 : i32
    %c0_i32_0 = arith.constant 0 : i32
    return %arg0, %c0_i32 : i32, i32
  }
  func.func @transform_2(%arg0: i32) -> (i32, i32) {
    %c0_i32 = arith.constant 0 : i32
    %c0_i32_0 = arith.constant 0 : i32
    %c0_i32_1 = arith.constant 0 : i32
    return %c0_i32, %c0_i32_0 : i32, i32
  }
  func.func @transform_3(%arg0: i32) -> (i32, i32) {
    %c0_i32 = arith.constant 0 : i32
    %c0_i32_0 = arith.constant 0 : i32
    %c0_i32_1 = arith.constant 0 : i32
    return %c0_i32, %c0_i32_0 : i32, i32
  }
  func.func @transform_4(%arg0: i32) -> (i32, i32) {
    %c0_i32 = arith.constant 0 : i32
    %c0_i32_0 = arith.constant 0 : i32
    %c0_i32_1 = arith.constant 0 : i32
    return %c0_i32, %c0_i32_0 : i32, i32
  }
  func.func @transform_5(%arg0: i32) -> (i32, i32) {
    %c0_i32 = arith.constant 0 : i32
    %c0_i32_0 = arith.constant 0 : i32
    %c0_i32_1 = arith.constant 0 : i32
    return %c0_i32, %c0_i32_0 : i32, i32
  }
  func.func @transform_6(%arg0: i32) -> (i32, i32) {
    %c0_i32 = arith.constant 0 : i32
    %c0_i32_0 = arith.constant 0 : i32
    %c0_i32_1 = arith.constant 0 : i32
    return %c0_i32, %c0_i32_0 : i32, i32
  }
  func.func @transform_7(%arg0: i32) -> (i32, i32) {
    %c0_i32 = arith.constant 0 : i32
    %c0_i32_0 = arith.constant 0 : i32
    %c0_i32_1 = arith.constant 0 : i32
    return %c0_i32, %c0_i32_0 : i32, i32
  }
  func.func @transform_8(%arg0: i32) -> (i32, i32) {
    %c0_i32 = arith.constant 0 : i32
    %c0_i32_0 = arith.constant 0 : i32
    return %arg0, %c0_i32 : i32, i32
  }
}

</mosaic_0001>

<bundles_post_ra>
// kernel: tpu_custom_call.1
= control target key start
LH: loop header
LB: loop body
LE: loop exit
PB: predicated region body
PF: predicated region fallthrough
CT: control target
= control target key end

     0   :  { %s1999_s0 = inlined_call_operand.hbm [shape: f32[16,128], index: 0, kind: input, shape index: {}]   ;;  %s2000_s1 = inlined_call_operand.hbm [shape: f32[16,128], index: 1, kind: input, shape index: {}]   ;;  %s2001_s2 = inlined_call_operand.hbm [shape: bf16[128,384], index: 2, kind: input, shape index: {}]   ;;  %s2002_s3 = inlined_call_operand.vmem [shape: f32[1,384], index: 3, kind: input, shape index: {}]   ;;  %s2003_s4 = inlined_call_operand.hbm [shape: bf16[128,256], index: 4, kind: input, shape index: {}]   ;;  %s2004_s5 = inlined_call_operand.vmem [shape: f32[1,256], index: 5, kind: input, shape index: {}]   ;;  %s2005_s6 = inlined_call_operand.hbm [shape: bf16[128,128], index: 6, kind: input, shape index: {}]   ;;  %s2006_s7 = inlined_call_operand.vmem [shape: f32[1,128], index: 7, kind: input, shape index: {}]   ;;  %s2007_s8 = inlined_call_operand.hbm [shape: f32[16,128], index: 8, kind: output, shape index: {}]  }
   0x1   :  { %2013 = sst [smem:[#allocation19_spill]] %s2001_s2 }
   0x2   :  { %2014 = sst [smem:[#allocation20_spill]] %s2003_s4 }
   0x3   :  { %2015 = sst [smem:[#allocation21_spill]] %s2005_s6 }
   0x4   :  { %13 = vsyncpa [#allocation3], 0 }
   0x5   :  { %15 = vsyncpa [#allocation3 + $0x1], 0 }
   0x6   :  { %16 = vsyncpa [#allocation6], 0 }
   0x7   :  { %18 = vsyncpa [#allocation6 + $0x1], 0 }
   0x8   :  { %19 = vsyncpa [#allocation9], 0 }
   0x9   :  { %20 = vsyncpa [#allocation4], 0 }
   0xa   :  { %22 = vsyncpa [#allocation4 + $0x1], 0  ;;  %s1669_s27 = smov 0   ;;  %s1671_s28 = smov 0  }
   0xb   :  { %s1673_s29 = smov 0   ;;  %s1675_s30 = smov 0  }
   0xc LB: > { %s1690_s9 = sadd.s32 4294967295, %s1607_s30   ;;  %s1082_s10 = sadd.s32 4294967294, %s1607_s30   ;;  %s1607_s30 = sphi %s1675_s30, %s2043_s30   ;;  %s1603_s29 = sphi %s1673_s29, %s2042_s29   ;;  %s1599_s28 = sphi %s1671_s28, %s2041_s28   ;;  %s1595_s27 = sphi %s1669_s27, %s2040_s27  }
   0xd   : > { %p48_p0 = scmp.ne.s32.totalorder %s1599_s28, %s1595_s27  ;;  %p2008_p1 = scmp.eq.s32.totalorder %s1690_s9, 0 }
   0xe   : > { %p230_p3 = scmp.eq.s32.totalorder %s1082_s10, 1  ;;  %p1083_p5 = scmp.ge.s32.totalorder %s1607_s30, 1 }
   0xf   : > { %p1699_p4 = por %p2008_p1, %p48_p0  ;;  %p237_p7 = scmp.lt.s32.totalorder %s1607_s30, 3 }
  0x10   : > { %p1704_p6 = por %p230_p3, %p48_p0  ;;  %s1609_s14 = smov [#allocation7]  }
  0x11   : > { %s2016_s11 = scalar_select %p1699_p4, 1, 0 }
  0x12   : > { %s2017_s12 = scalar_select %p1704_p6, 1, 0 }
  0x13   : > { %p1709_p8 = pnand %p1083_p5, %p237_p7  ;;  %s249_s15 = sshll.u32 %s1609_s14, 4  ;;  %s1713_s15 = int_to_ptr.vmem [resolvable:$true] %s249_s15 }
  0x14   : > { %2018 = sst [smem:[#allocation17_spill]] %s2017_s12  ;;  %s1610_s17 = smov [#allocation8]  }
  0x15   : > { %s2019_s13 = scalar_select %p1709_p8, 1, 0 }
  0x16   : > { %p1238_p9 = pneg %p1709_p8  ;;  %s265_s18 = sshll.u32 %s1610_s17, 4  ;;  %s1724_s18 = int_to_ptr.vmem [resolvable:$true] %s265_s18 }
  0x17   : > { %s2021_s2 = sld [smem:[#allocation19_spill]] }
  0x18   : > { %p1720_p11 = pnand %p1238_p9, %p2008_p1 }
  0x1a   : > { %p1734_p13 = pneg %p1720_p11 }
  0x1d   : > { %s1385_s21 = scalar_lea.hbm %s2021_s2, 3072 }
  0x1e   : > { %p1386_p12 = scmp.ne.s32.totalorder %s2021_s2, %s1385_s21  ;;  %p1392_p5 = scmp.lt.u32.totalorder %s1385_s21, %s2021_s2 }
  0x20   : > { %p1388_p0 = pnand %p1734_p13, %p1386_p12 }
  0x22   : > { %p1389_p3 = pneg %p1388_p0 }
  0x24   : > { %p1394_p7 = pnand %p1392_p5, %p1389_p3 }
  0x26   : > { %1397 = shalt.err (!%p1394_p7)
}
  0x27   : > { %s1398_s10 = scalar_lea.vmem %s1713_s15, 3072  ;;  %p1406_p2 = scmp.lt.s32.totalorder %s1713_s15, %s1713_s15 }
  0x28   : > { %p1399_p9 = scmp.ne.s32.totalorder %s1713_s15, %s1398_s10  ;;  %p1407_p6 = scmp.lt.s32.totalorder %s1398_s10, %s1398_s10 }
  0x2a   : > { %p1401_p10 = pnand %p1399_p9, %p1734_p13  ;;  %p1408_p12 = por %p1407_p6, %p1406_p2 }
  0x2c   : > { %p1402_p1 = pneg %p1401_p10 }
  0x2e   : > { %p1409_p0 = pnand %p1408_p12, %p1402_p1 }
  0x30   : > { %1412 = shalt.err (!%p1409_p0)
}
  0x31   : > { %s1611_s14 = smov 192   ;;  %s1612_s17 = smov 12  }
  0x32   : > { %1241 = dma.hbm_to_vmem [thread:$0]  (!%p1720_p11), %s2021_s2, 3072, %s1713_s15, [#allocation6], %s1611_s14, %s1611_s14, %s1612_s17  }
  0x33   : > { %s2023_s4 = sld [smem:[#allocation20_spill]] }
  0x39   : > { %s1413_s23 = scalar_lea.hbm %s2023_s4, 2048 }
  0x3a   : > { %p1414_p2 = scmp.ne.s32.totalorder %s2023_s4, %s1413_s23  ;;  %p1420_p10 = scmp.lt.u32.totalorder %s1413_s23, %s2023_s4 }
  0x3c   : > { %p1416_p1 = pnand %p1414_p2, %p1734_p13 }
  0x3e   : > { %p1417_p6 = pneg %p1416_p1 }
  0x40   : > { %p1422_p3 = pnand %p1420_p10, %p1417_p6 }
  0x42   : > { %1425 = shalt.err (!%p1422_p3)
}
  0x43   : > { %s1426_s15 = scalar_lea.vmem %s1724_s18, 2048  ;;  %p1434_p12 = scmp.lt.s32.totalorder %s1724_s18, %s1724_s18 }
  0x44   : > { %p1427_p5 = scmp.ne.s32.totalorder %s1724_s18, %s1426_s15  ;;  %p1435_p0 = scmp.lt.s32.totalorder %s1426_s15, %s1426_s15 }
  0x46   : > { %p1429_p7 = pnand %p1427_p5, %p1734_p13  ;;  %p1436_p2 = por %p1435_p0, %p1434_p12 }
  0x48   : > { %p1430_p9 = pneg %p1429_p7 }
  0x4a   : > { %p1437_p1 = pnand %p1436_p2, %p1430_p9 }
  0x4c   : > { %1440 = shalt.err (!%p1437_p1)
}
  0x4d   : > { %s1613_s14 = smov 128   ;;  %s1614_s12 = smov 8  }
  0x4e   : > { %1244 = dma.hbm_to_vmem [thread:$0]  (!%p1720_p11), %s2023_s4, 2048, %s1724_s18, [#allocation9], %s1613_s14, %s1613_s14, %s1614_s12  }
  0x4f   : > { %s1615_s20 = smov [#allocation10]   ;;  %s2024_s6 = sld [smem:[#allocation21_spill]] }
  0x50   : > { %s281_s21 = sshll.u32 %s1615_s20, 4  ;;  %s282_s21 = int_to_ptr.vmem [resolvable:$true] %s281_s21 }
  0x55   : > { %s1441_s25 = scalar_lea.hbm %s2024_s6, 1024 }
  0x56   : > { %p1442_p6 = scmp.ne.s32.totalorder %s2024_s6, %s1441_s25  ;;  %p1448_p5 = scmp.lt.u32.totalorder %s1441_s25, %s2024_s6 }
  0x58   : > { %p1444_p10 = pnand %p1442_p6, %p1734_p13 }
  0x5a   : > { %p1445_p3 = pneg %p1444_p10 }
  0x5c   : > { %p1450_p7 = pnand %p1448_p5, %p1445_p3 }
  0x5e   : > { %1453 = shalt.err (!%p1450_p7)
}
  0x5f   : > { %s1454_s18 = scalar_lea.vmem %s282_s21, 1024  ;;  %p1462_p2 = scmp.lt.s32.totalorder %s282_s21, %s282_s21 }
  0x60   : > { %p1455_p9 = scmp.ne.s32.totalorder %s282_s21, %s1454_s18  ;;  %p1463_p1 = scmp.lt.s32.totalorder %s1454_s18, %s1454_s18 }
  0x62   : > { %p1457_p12 = pnand %p1455_p9, %p1734_p13  ;;  %p1464_p4 = por %p1463_p1, %p1462_p2 }
  0x64   : > { %p1458_p0 = pneg %p1457_p12 }
  0x66   : > { %p1465_p8 = pnand %p1464_p4, %p1458_p0 }
  0x68   : > { %1468 = shalt.err (!%p1465_p8)
}
  0x69   : > { %s1616_s14 = smov 64   ;;  %s1617_s2 = smov 4  }
  0x6a   : > { %1247 = dma.hbm_to_vmem [thread:$0]  (!%p1720_p11), %s2024_s6, 1024, %s282_s21, [#allocation9], %s1616_s14, %s1616_s14, %s1617_s2  }
  0x6b   : > { %s1797_s17 = sadd.s32 1, %s1607_s30   ;;  %s35_s20 = sadd.s32 1, %s1603_s29 }
  0x6c   : > { %s32_s19 = ssub.s32 %s1607_s30, %s1797_s17  ;;  %p42_p8 = scmp.ne.s32.totalorder %s1603_s29, %s1599_s28 }
  0x6d   : > { %p33_p4 = scmp.eq.s32.totalorder %s32_s19, 0  ;;  %p43_p13 = scmp.eq.s32.totalorder %s1607_s30, 0 }
  0x6e   : > { %p1262_p6 = scmp.lt.s32.totalorder %s1607_s30, 2  ;;  %p2026_p3 = scmp.eq.s32.totalorder %s1690_s9, 1 }
  0x6f   : > { %s1807_s22 = scalar_select %p33_p4, %s1603_s29, %s35_s20  }
  0x70   : > { %p44_p10 = por %p43_p13, %p42_p8  ;;  %p1811_p5 = por %p2026_p3, %p42_p8 }
  0x71   : > { %2025 = sst [smem:[#allocation18_spill]] %s1807_s22  ;;  %s298_s16 = sand.u32 1, %s1603_s29  }
  0x72   : > { %s2027_s23 = scalar_select %p1811_p5, 1, 0 }
  0x73   : > { %s1089_s25 = sshll.u32 %s1607_s30, 7  ;;  %s1817_s21 = sshll.u32 %s298_s16, 3 }
  0x74   : > { %s1822_s15 = scalar_lea.hbm %s1999_s0, %s1089_s25  ;;  %s302_s18 = scalar_lea.vmem [#allocation2], %s1817_s21 }
  0x75   : > { %s309_s14 = sshll.u32 %s302_s18, 4  ;;  %p1825_p11 = pnand %p1262_p6, %p44_p10  ;;  %s1829_s14 = int_to_ptr.vmem [resolvable:$true] %s309_s14 }
  0x76   : > { %s1834_s19 = scalar_lea.hbm %s2000_s1, %s1089_s25  ;;  %s299_s20 = scalar_lea.sflag [#allocation3], %s298_s16 }
  0x77   : > { %s1469_s26 = scalar_lea.hbm %s1822_s15, 128  ;;  %p1471_p9 = pneg %p1825_p11 }
  0x78   : > { %p1470_p7 = scmp.ne.s32.totalorder %s1822_s15, %s1469_s26  ;;  %s1474_s4 = scalar_lea.hbm %s1999_s0, 256 }
  0x79   : > { %p1475_p2 = scmp.lt.u32.totalorder %s1822_s15, %s1999_s0  ;;  %p1476_p1 = scmp.lt.u32.totalorder %s1474_s4, %s1469_s26 }
  0x7a   : > { %p1472_p12 = pnand %p1471_p9, %p1470_p7  ;;  %p1478_p8 = scmp.lt.u32.totalorder %s1469_s26, %s1822_s15 }
  0x7b   : > { %p1477_p4 = por %p1476_p1, %p1475_p2 }
  0x7c   : > { %p1473_p0 = pneg %p1472_p12 }
  0x7d   : > { %p1479_p13 = por %p1478_p8, %p1477_p4 }
  0x7f   : > { %p1480_p6 = pnand %p1479_p13, %p1473_p0 }
  0x81   : > { %1483 = shalt.err (!%p1480_p6)
}
  0x82   : > { %s1484_s16 = scalar_lea.vmem %s1829_s14, 128  ;;  %s1618_s25 = smov [#allocation2]  }
  0x83   : > { %p1485_p10 = scmp.ne.s32.totalorder %s1829_s14, %s1484_s16  ;;  %s1489_s24 = sshll.u32 %s1618_s25, 4  ;;  %s1490_s24 = int_to_ptr.vmem [resolvable:$false] %s1489_s24 }
  0x84   : > { %s1491_s6 = scalar_lea.vmem %s1490_s24, 256  ;;  %p1492_p12 = scmp.lt.s32.totalorder %s1829_s14, %s1490_s24 }
  0x85   : > { %p1487_p3 = pnand %p1485_p10, %p1471_p9  ;;  %p1493_p2 = scmp.lt.s32.totalorder %s1491_s6, %s1484_s16 }
  0x87   : > { %p1488_p7 = pneg %p1487_p3  ;;  %p1494_p1 = por %p1493_p2, %p1492_p12 }
  0x89   : > { %p1495_p4 = pnand %p1494_p1, %p1488_p7 }
  0x8b   : > { %1498 = shalt.err (!%p1495_p4)
}
  0x8c   : > { %1251 = dma.hbm_to_vmem [thread:$0]  (!%p1825_p11), %s1822_s15, 128, %s1829_s14, %s299_s20  }
  0x8d   : > { %s316_s4 = sand.u32 1, %s1607_s30   ;;  %s320_s22 = scalar_lea.vmem [#allocation5], %s1817_s21 }
  0x8e   : > { %s327_s12 = sshll.u32 %s320_s22, 4  ;;  %s317_s26 = scalar_lea.sflag [#allocation6], %s316_s4  ;;  %s328_s12 = int_to_ptr.vmem [resolvable:$true] %s327_s12 }
  0x8f   : > { %s1499_s10 = scalar_lea.hbm %s1834_s19, 128  ;;  %s1504_s25 = scalar_lea.hbm %s2000_s1, 256 }
  0x90   : > { %p1500_p0 = scmp.ne.s32.totalorder %s1834_s19, %s1499_s10  ;;  %p1505_p6 = scmp.lt.u32.totalorder %s1834_s19, %s2000_s1 }
  0x91   : > { %p1506_p10 = scmp.lt.u32.totalorder %s1504_s25, %s1499_s10  ;;  %p1508_p7 = scmp.lt.u32.totalorder %s1499_s10, %s1834_s19 }
  0x92   : > { %p1502_p8 = pnand %p1500_p0, %p1471_p9 }
  0x93   : > { %p1507_p3 = por %p1506_p10, %p1505_p6 }
  0x94   : > { %p1503_p13 = pneg %p1502_p8 }
  0x95   : > { %p1509_p12 = por %p1508_p7, %p1507_p3 }
  0x97   : > { %p1510_p2 = pnand %p1509_p12, %p1503_p13 }
  0x99   : > { %1513 = shalt.err (!%p1510_p2)
}
  0x9a   : > { %s1514_s21 = scalar_lea.vmem %s328_s12, 128  ;;  %s1619_s15 = smov [#allocation5]  }
  0x9b   : > { %p1515_p1 = scmp.ne.s32.totalorder %s328_s12, %s1514_s21  ;;  %s1519_s14 = sshll.u32 %s1619_s15, 4  ;;  %s1520_s14 = int_to_ptr.vmem [resolvable:$false] %s1519_s14 }
  0x9c   : > { %s1521_s20 = scalar_lea.vmem %s1520_s14, 256  ;;  %p1522_p8 = scmp.lt.s32.totalorder %s328_s12, %s1520_s14 }
  0x9d   : > { %p1517_p4 = pnand %p1515_p1, %p1471_p9  ;;  %p1523_p5 = scmp.lt.s32.totalorder %s1521_s20, %s1514_s21 }
  0x9f   : > { %p1518_p0 = pneg %p1517_p4  ;;  %p1524_p6 = por %p1523_p5, %p1522_p8 }
  0xa1   : > { %p1525_p10 = pnand %p1524_p6, %p1518_p0 }
  0xa3   : > { %1528 = shalt.err (!%p1525_p10)
}
  0xa4   : > { %1254 = dma.hbm_to_vmem [thread:$0]  (!%p1825_p11), %s1834_s19, 128, %s328_s12, %s317_s26  }
  0xa5   : > { %p2029_p13 = scmp.ne.s32.totalorder %s2019_s13, 0 }
  0xa6   : > { %s1885_s4 = sand.u32 (!%p2029_p13), 1, %s1599_s28   ;;  %p2030_p5 = scmp.ne.s32.totalorder (!%p2029_p13), %s2016_s11, 0 }
  0xa7   : > { %336 = sbr.rel (%p2029_p13) target bundleno = 742 (0x2e6), region = 52  ;;  %s1888_s22 = sshll.u32 (!%p2029_p13), %s1885_s4, 3 }
  0xa8   : > { %s339_s10 = scalar_lea.sflag (!%p2029_p13), [#allocation3], %s1885_s4  ;;  %s342_s18 = scalar_lea.vmem (!%p2029_p13), [#allocation2], %s1888_s22 }
  0xae   : > { %1574 = dma.done.wait (%p2030_p5), %s339_s10, 128  }
  0xaf   : > { %1576 = vsyncadd (%p2030_p5), %s339_s10, 4294967168  ;;  %s347_s13 = sand.u32 1, %s1690_s9   ;;  %s351_s19 = scalar_lea.vmem [#allocation5], %s1888_s22 }
  0xb0   : > { %s348_s2 = scalar_lea.sflag [#allocation6], %s347_s13 }
  0xb1   : > { %1578 = dma.done.wait (%p2030_p5), %s348_s2, 128  }
  0xb2   : > { %1580 = vsyncadd (%p2030_p5), %s348_s2, 4294967168  ;;  %p2031_p11 = scmp.eq.s32.totalorder %s1690_s9, 0 }
  0xb4   : > { %1582 = dma.done.wait (%p2031_p11), [#allocation6], 3072   ;;  %p2032_p9 = pmov %p2031_p11 }
  0xb6   : > { %1584 = vsyncadd (%p2032_p9), [#allocation6], 4294964224  ;;  %p2033_p3 = pmov %p2032_p9 }
  0xb8   : > { %1586 = dma.done.wait (%p2033_p3), [#allocation9], 3072   ;;  %p2034_p7 = pmov %p2033_p3 }
  0xb9   : > { %v1620_v0 = vmov 0   ;;  %v1621_v1 = vmov 0.0   ;;  %vm1622_vm0 = vmmov 0   ;;  %v1311_v2 = vld [vmem:[#allocation7 + $0x4] ss:$12 sps:$4 sm:$0xff]   ;;  %v1368_v47 = vld [vmem:[#allocation10 + $0x8] sm:$0xff]   ;;  %v440_v54 = vlaneseq }
  0xba   : > { %1588 = vsyncadd (%p2034_p7), [#allocation9], 4294964224  ;;  %615 = vmatprep.mubr.bf16.mxu0 %v1620_v0  ;;  %1172 = vmatprep.subr.bf16.mxu1 %v1621_v1  ;;  %v1313_v3 = vld [vmem:[#allocation7] ss:$12 sps:$4 sm:$0xff]   ;;  %v1314_v4 = vld [vmem:[#allocation7 + $0x1c] ss:$12 sps:$4 sm:$0xff]  }
  0xbb   : > { %1188 = vmatprep.mubr.msk.bf16.mxu1 %vm1622_vm0, %v1621_v1  ;;  %583 = vmatprep.subr.bf16.mxu0 %v1311_v2  ;;  %v1316_v5 = vld [vmem:[#allocation7 + $0x18] ss:$12 sps:$4 sm:$0xff]   ;;  %v1317_v6 = vld [vmem:[#allocation7 + $0x34] ss:$12 sps:$4 sm:$0xff]   ;;  %v1319_v7 = vld [vmem:[#allocation7 + $0x30] ss:$12 sps:$4 sm:$0xff]  }
  0xbc   : > { %584 = vmatpush1.bf16.msra.mxu0 %v1313_v3  ;;  %v1320_v8 = vld [vmem:[#allocation7 + $0x4c] ss:$12 sps:$4 sm:$0xff]   ;;  %v1322_v9 = vld [vmem:[#allocation7 + $0x48] ss:$12 sps:$4 sm:$0xff]   ;;  %v1323_v10 = vld [vmem:[#allocation7 + $0x64] ss:$12 sps:$4 sm:$0xff]  }
  0xbd   : > { %585 = vmatprep.subr.bf16.mxu0 %v1314_v4  ;;  %v1325_v11 = vld [vmem:[#allocation7 + $0x60] ss:$12 sps:$4 sm:$0xff]   ;;  %v1326_v12 = vld [vmem:[#allocation7 + $0x7c] ss:$12 sps:$4 sm:$0xff]   ;;  %v1328_v13 = vld [vmem:[#allocation7 + $0x78] ss:$12 sps:$4 sm:$0xff]  }
  0xbe   : > { %v1329_v14 = vld [vmem:[#allocation7 + $0x94] ss:$12 sps:$4 sm:$0xff]   ;;  %v1331_v15 = vld [vmem:[#allocation7 + $0x90] ss:$12 sps:$4 sm:$0xff]   ;;  %v1332_v17 = vld [vmem:[#allocation7 + $0xac] ss:$12 sps:$4 sm:$0xff]  }
  0xbf   : > { %v1359_v16 = vld [vmem:[#allocation7 + $0x8] ss:$12 sps:$4 sm:$0xff]   ;;  %v1360_v18 = vld [vmem:[#allocation7 + $0x20] ss:$12 sps:$4 sm:$0xff]   ;;  %v1361_v22 = vld [vmem:[#allocation7 + $0x38] ss:$12 sps:$4 sm:$0xff]  }
  0xc0   : > { %586 = vmatpush1.bf16.msra.mxu0 %v1316_v5  ;;  %1173 = vmatpush3.bf16.msra.mxu1 %v1359_v16  ;;  %v1334_v19 = vld [vmem:[#allocation7 + $0xa8] ss:$12 sps:$4 sm:$0xff]   ;;  %v1337_v20 = vld [vmem:[#allocation8 + $0x4] ss:$8 sps:$4 sm:$0xff]   ;;  %v1362_v26 = vld [vmem:[#allocation7 + $0x50] ss:$12 sps:$4 sm:$0xff]  }
  0xc1   : > { %587 = vmatprep.subr.bf16.mxu0 %v1317_v6  ;;  %1174 = vmatprep.subr.bf16.mxu1 %v1621_v1  ;;  %v404_v21 = vld [vmem:[%s351_s19] sm:$0xff]  ;;  %v1335_v23 = vld [vmem:[#allocation8] ss:$8 sps:$4 sm:$0xff]   ;;  %v1343_v28 = vld [vmem:[#allocation8 + $0x24] ss:$8 sps:$4 sm:$0xff]   ;;  %v441_v55 = vshrl.u32 %v440_v54, 7 }
  0xc2   : > { %v405_v24 = vpack.c.bf16 %v404_v21, %v404_v21  ;;  %v1340_v25 = vld [vmem:[#allocation8 + $0x14] ss:$8 sps:$4 sm:$0xff]   ;;  %v1338_v27 = vld [vmem:[#allocation8 + $0x10] ss:$8 sps:$4 sm:$0xff]   ;;  %v1341_v30 = vld [vmem:[#allocation8 + $0x20] ss:$8 sps:$4 sm:$0xff]  }
  0xc3   : > { %v1363_v29 = vld [vmem:[#allocation7 + $0x68] ss:$12 sps:$4 sm:$0xff]   ;;  %v1364_v32 = vld [vmem:[#allocation7 + $0x80] ss:$12 sps:$4 sm:$0xff]   ;;  %v1344_v33 = vld [vmem:[#allocation8 + $0x30] ss:$8 sps:$4 sm:$0xff]  }
  0xc4   : > { %588 = vmatpush1.bf16.msra.mxu0 %v1319_v7  ;;  %1175 = vmatpush3.bf16.msra.mxu1 %v1360_v18  ;;  %v1346_v31 = vld [vmem:[#allocation8 + $0x34] ss:$8 sps:$4 sm:$0xff]   ;;  %v1349_v34 = vld [vmem:[#allocation8 + $0x44] ss:$8 sps:$4 sm:$0xff]   ;;  %v1347_v36 = vld [vmem:[#allocation8 + $0x40] ss:$8 sps:$4 sm:$0xff]  }
  0xc5   : > { %589 = vmatprep.subr.bf16.mxu0 %v1320_v8  ;;  %1176 = vmatprep.subr.bf16.mxu1 %v1621_v1  ;;  %v1365_v35 = vld [vmem:[#allocation7 + $0x98] ss:$12 sps:$4 sm:$0xff]   ;;  %v1352_v37 = vld [vmem:[#allocation8 + $0x54] ss:$8 sps:$4 sm:$0xff]   ;;  %v1353_v41 = vld [vmem:[#allocation8 + $0x60] ss:$8 sps:$4 sm:$0xff]  }
  0xc6   : > { %v1366_v38 = vld [vmem:[#allocation7 + $0xb0] ss:$12 sps:$4 sm:$0xff]   ;;  %v1355_v40 = vld [vmem:[#allocation8 + $0x64] ss:$8 sps:$4 sm:$0xff]   ;;  %v442_v56 = vsub.s32 0, %v441_v55  ;;  %s1151_s6 = sshll.u32 %s1690_s9, 7 }
  0xc7   : > { %v1350_v39 = vld [vmem:[#allocation8 + $0x50] ss:$8 sps:$4 sm:$0xff]   ;;  %v1358_v42 = vld [vmem:[#allocation8 + $0x74] ss:$8 sps:$4 sm:$0xff]   ;;  %v1927_v44 = vld [vmem:[%s342_s18] sm:$0xff]  ;;  %s400_s21 = scalar_lea.vmem [#allocation11], %s1888_s22  ;;  %s1955_s10 = scalar_lea.hbm %s2007_s8, %s1151_s6 }
  0xc8   : > { %590 = vmatpush1.bf16.msra.mxu0 %v1322_v9  ;;  %1177 = vmatpush3.bf16.msra.mxu1 %v1361_v22  ;;  %v1356_v43 = vld [vmem:[#allocation8 + $0x70] ss:$8 sps:$4 sm:$0xff]   ;;  %v403_v45 = vpack.c.bf16 %v1927_v44, %v1927_v44  ;;  %v1367_v46 = vld [vmem:[#allocation10] sm:$0xff]   ;;  %v1372_v51 = vld [vmem:[#allocation10 + $0x28] sm:$0xff]   ;;  %s961_s15 = sshll.u32 %s400_s21, 4  ;;  %s948_s18 = scalar_lea.sflag [#allocation4], %s1885_s4  ;;  %s1957_s15 = int_to_ptr.vmem [resolvable:$true] %s961_s15 }
  0xc9   : > { %591 = vmatprep.subr.bf16.mxu0 %v1323_v10  ;;  %1178 = vmatprep.subr.bf16.mxu1 %v1621_v1  ;;  %v1369_v48 = vld [vmem:[#allocation10 + $0x10] sm:$0xff]   ;;  %v1370_v49 = vld [vmem:[#allocation10 + $0x18] sm:$0xff]   ;;  %v1371_v50 = vld [vmem:[#allocation10 + $0x20] sm:$0xff]   ;;  %s1529_s13 = scalar_lea.vmem %s1957_s15, 128  ;;  %p2035_p2 = scmp.ne.s32.totalorder %s2027_s23, 0 }
  0xca   : > { %v1373_v52 = vld [vmem:[#allocation10 + $0x30] sm:$0xff]   ;;  %v1374_v53 = vld [vmem:[#allocation10 + $0x38] sm:$0xff]   ;;  %v438_v58 = vld [vmem:[%s2002_s3] sm:$0x7]  ;;  %p1530_p12 = scmp.ne.s32.totalorder %s1957_s15, %s1529_s13  ;;  %s1623_s9 = smov [#allocation11]  }
  0xcb   : > { %v680_v59 = vld [vmem:[%s2004_s5] sm:$0x3]  ;;  %v443_v63 = vrot.slane %v438_v58, %v442_v56  ;;  %s1533_s22 = sshll.u32 %s1623_s9, 4  ;;  %s1534_s22 = int_to_ptr.vmem [resolvable:$false] %s1533_s22 }
  0xcc   : > { %592 = vmatpush1.bf16.msra.mxu0 %v1325_v11  ;;  %1179 = vmatpush3.bf16.msra.mxu1 %v1362_v26  ;;  %p1531_p1 = pnand %p1530_p12, %p2035_p2  ;;  %s1535_s2 = scalar_lea.vmem %s1534_s22, 256 }
  0xcd   : > { %593 = vmatprep.subr.bf16.mxu0 %v1326_v12  ;;  %1180 = vmatprep.subr.bf16.mxu1 %v1621_v1  ;;  %p1536_p0 = scmp.lt.s32.totalorder %s1957_s15, %s1534_s22  ;;  %p1537_p8 = scmp.lt.s32.totalorder %s1535_s2, %s1529_s13 }
  0xce   : > { %p1532_p4 = pneg %p1531_p1 }
  0xcf   : > { %p1538_p6 = por %p1537_p8, %p1536_p0 }
  0xd0   : > { %594 = vmatpush1.bf16.msra.mxu0 %v1328_v13  ;;  %1181 = vmatpush3.bf16.msra.mxu1 %v1363_v29  ;;  %v446_v13 = vsub.s32 1, %v441_v55 }
  0xd1   : > { %595 = vmatprep.subr.bf16.mxu0 %v1329_v14  ;;  %1182 = vmatprep.subr.bf16.mxu1 %v1621_v1  ;;  %p1539_p10 = pnand %p1538_p6, %p1532_p4 }
  0xd2   : > { %v447_v14 = vrot.slane %v438_v58, %v446_v13 }
  0xd4   : > { %596 = vmatpush1.bf16.msra.mxu0 %v1331_v15  ;;  %1183 = vmatpush3.bf16.msra.mxu1 %v1364_v32  ;;  %v689_v15 = vrot.slane %v680_v59, %v446_v13 }
  0xd5   : > { %597 = vmatprep.subr.bf16.mxu0 %v1332_v17  ;;  %1184 = vmatprep.subr.bf16.mxu1 %v1621_v1 }
  0xd6   : > { %v1214_v16 = vadd.f32 %v689_v15, %v447_v14 }
  0xd8   : > { %598 = vmatpush1.bf16.msra.mxu0 %v1334_v19  ;;  %1185 = vmatpush3.bf16.msra.mxu1 %v1365_v35  ;;  %v450_v19 = vsub.s32 2, %v441_v55 }
  0xd9   : > { %772 = vmatprep.subr.bf16.mxu0 %v1337_v20  ;;  %1186 = vmatprep.subr.bf16.mxu1 %v1621_v1 }
  0xda   : > { %v451_v20 = vrot.slane %v438_v58, %v450_v19 }
  0xdb   : > { %616 = vmatmul.mubr.bf16.vlgmr.msra.gmra.mrb[0].mxu0 %v405_v24 }
  0xdc   : > { %773 = vmatpush1.bf16.msra.mxu0 %v1335_v23  ;;  %804 = vmatprep.mubr.bf16.mxu0 %v1620_v0  ;;  %v685_v0 = vrot.slane %v680_v59, %v442_v56 }
  0xdd   : > { %774 = vmatprep.subr.bf16.mxu0 %v1340_v25  ;;  %1187 = vmatpush3.bf16.msra.mxu1 %v1366_v38 }
  0xde   : > { %1192 = vmatprep.subr.bf16.mxu1 %v1621_v1  ;;  %v1212_v2 = vadd.f32 %v685_v0, %v443_v63 }
  0xe0   : > { %775 = vmatpush1.bf16.msra.mxu0 %v1338_v27  ;;  %1189 = vmatmul.mubr.bf16.vlgmr.msra.gmra.mrb[0].mxu1 %v405_v24  ;;  %v1149_v24 = vld [vmem:[%s2006_s7] ss:$0 sm:$0xff] }
  0xe1   : > { %776 = vmatprep.subr.bf16.mxu0 %v1343_v28  ;;  %1208 = vmatprep.mubr.msk.bf16.mxu1 %vm1622_vm0, %v1621_v1 }
  0xe2   : > { %1193 = vmatpush3.bf16.msra.mxu1 %v1367_v46 }
  0xe3   : > { %1194 = vmatprep.subr.bf16.mxu1 %v1621_v1 }
  0xe4   : > { %777 = vmatpush1.bf16.msra.mxu0 %v1341_v30 }
  0xe5   : > { %778 = vmatprep.subr.bf16.mxu0 %v1346_v31 }
  0xe6   : > { %1195 = vmatpush3.bf16.msra.mxu1 %v1368_v47 }
  0xe7   : > { %1196 = vmatprep.subr.bf16.mxu1 %v1621_v1 }
  0xe8   : > { %779 = vmatpush1.bf16.msra.mxu0 %v1344_v33 }
  0xe9   : > { %780 = vmatprep.subr.bf16.mxu0 %v1349_v34 }
  0xea   : > { %1197 = vmatpush3.bf16.msra.mxu1 %v1369_v48 }
  0xeb   : > { %1198 = vmatprep.subr.bf16.mxu1 %v1621_v1 }
  0xec   : > { %781 = vmatpush1.bf16.msra.mxu0 %v1347_v36 }
  0xed   : > { %782 = vmatprep.subr.bf16.mxu0 %v1352_v37 }
  0xee   : > { %1199 = vmatpush3.bf16.msra.mxu1 %v1370_v49 }
  0xef   : > { %1200 = vmatprep.subr.bf16.mxu1 %v1621_v1 }
  0xf0   : > { %783 = vmatpush1.bf16.msra.mxu0 %v1350_v39 }
  0xf1   : > { %784 = vmatprep.subr.bf16.mxu0 %v1355_v40 }
  0xf2   : > { %1201 = vmatpush3.bf16.msra.mxu1 %v1371_v50 }
  0xf3   : > { %1202 = vmatprep.subr.bf16.mxu1 %v1621_v1 }
  0xf4   : > { %785 = vmatpush1.bf16.msra.mxu0 %v1353_v41 }
  0xf5   : > { %786 = vmatprep.subr.bf16.mxu0 %v1358_v42 }
  0xf6   : > { %1203 = vmatpush3.bf16.msra.mxu1 %v1372_v51 }
  0xf7   : > { %1204 = vmatprep.subr.bf16.mxu1 %v1621_v1 }
  0xf8   : > { %787 = vmatpush1.bf16.msra.mxu0 %v1356_v43 }
  0xfa   : > { %1205 = vmatpush3.bf16.msra.mxu1 %v1373_v52 }
  0xfb   : > { %805 = vmatmul.mubr.bf16.vlgmr.msra.gmra.mrb[0].mxu0 %v403_v45  ;;  %1206 = vmatprep.subr.bf16.mxu1 %v1621_v1 }
  0xfe   : > { %1207 = vmatpush3.bf16.msra.mxu1 %v1374_v53 }
 0x1b3   : > { %v658_v57 = vpop.f32.mrb[0].mxu1 }
 0x1b4   : > { %v1190_v60 = vpop.f32.mrb[1].mxu1  ;;  %v659_v21 = vadd.f32 %v658_v57, %v451_v20 }
 0x1b5   : > { %v661_v61 = vpop.f32.mrb[2].mxu1 }
 0x1b6   : > { %v1191_v62 = vpop.f32.mrb[3].mxu1 }
 0x1ce   : > { %v806_v1 = vpop.f32.mrb[0].mxu0 }
 0x1cf   : > { %v1213_v3 = vadd.f32 %v1212_v2, %v806_v1  ;;  %v808_v4 = vpop.f32.mrb[1].mxu0 }
 0x1d0   : > { %v810_v5 = vpop.f32.mrb[2].mxu0  ;;  %v1215_v17 = vadd.f32 %v1214_v16, %v808_v4 }
 0x1d1   : > { %v1139_v6 = vmul.f32 -1.442695, %v1213_v3  ;;  %v811_v7 = vpop.f32.mrb[3].mxu0 }
 0x1d2   : > { %v1140_v18 = vmul.f32 -1.442695, %v1215_v17 }
 0x1d3   : > { %1375 = vpow2.f32 %v1139_v6 }
 0x1dd   : > { %v1376_v8 = vpop.eup %1375 }
 0x1de   : > { %v821_v9 = vadd.f32 1.0, %v1376_v8 }
 0x1e0   : > { %1377 = vrcp.f32 %v821_v9 }
 0x1e1   : > { %1379 = vpow2.f32 %v1140_v18 }
 0x1ea   : > { %v1378_v10 = vpop.eup %1377 }
 0x1eb   : > { %v827_v11 = vmul.f32 %v1378_v10, %v1927_v44  ;;  %v1380_v22 = vpop.eup %1379 }
 0x1ec   : > { %v822_v28 = vadd.f32 1.0, %v1380_v22 }
 0x1ed   : > { %v828_v12 = vpack.c.bf16 %v827_v11, %v827_v11 }
 0x1ef   : > { %1209 = vmatmul.mubr.bf16.vlgmr.msra.gmra.mrb[4].mxu1 %v828_v12 }
 0x2c2   : > { %v927_v23 = vpop.f32.mrb[4].mxu1 }
 0x2c3   : > { %v933_v25 = vadd.f32 %v927_v23, %v659_v21  ;;  %v1210_v26 = vpop.f32.mrb[5].mxu1 }
 0x2c4   : > { %v930_v27 = vpop.f32.mrb[6].mxu1 }
 0x2c5   : > { %v941_v29 = vadd.f32 %v1149_v24, %v933_v25  ;;  %v1211_v30 = vpop.f32.mrb[7].mxu1 }
 0x2c7   : > { %1381 = vtanh.f32 %v941_v29 }
 0x2c8   : > { %1383 = vrcp.f32 %v822_v28 }
 0x2d1   : > { %v1382_v31 = vpop.eup %1381 }
 0x2d2   : > { %v943_v32 = vsub.f32 %v1382_v31, %v1927_v44  ;;  %v1384_v33 = vpop.eup %1383 }
 0x2d4   : > { %v944_v34 = vmul.f32 %v1384_v33, %v943_v32 }
 0x2d6   : > { %v945_v35 = vadd.f32 %v944_v34, %v1927_v44 }
 0x2d8   : > { %946 = vst [vmem:[%s400_s21] sm:$0xff] %v945_v35 }
 0x2d9   : > { %1542 = shalt.err (!%p1539_p10)
}
 0x2da   : > { %s1543_s4 = scalar_lea.hbm %s1955_s10, 128  ;;  %s1547_s12 = scalar_lea.hbm %s2007_s8, 256 }
 0x2db   : > { %p1544_p13 = scmp.ne.s32.totalorder %s1955_s10, %s1543_s4  ;;  %p1548_p9 = scmp.lt.u32.totalorder %s1955_s10, %s2007_s8 }
 0x2dc   : > { %p1549_p3 = scmp.lt.u32.totalorder %s1547_s12, %s1543_s4  ;;  %p1551_p12 = scmp.lt.u32.totalorder %s1543_s4, %s1955_s10 }
 0x2dd   : > { %p1545_p5 = pnand %p1544_p13, %p2035_p2 }
 0x2de   : > { %p1550_p7 = por %p1549_p3, %p1548_p9 }
 0x2df   : > { %p1546_p11 = pneg %p1545_p5 }
 0x2e0   : > { %p1552_p1 = por %p1551_p12, %p1550_p7 }
 0x2e2   : > { %p1553_p4 = pnand %p1552_p1, %p1546_p11 }
 0x2e4   : > { %1556 = shalt.err (!%p1553_p4)
}
 0x2e5   : > { %1236 = dma.vmem_to_hbm [thread:$0]  (%p2035_p2), %s1957_s15, 128, %s1955_s10, %s948_s18  }
 0x2e6 PF: > { %s2036_s25 = sld [smem:[#allocation17_spill]]  ;;  %s973_s24 = sand.u32 1, %s1595_s27  }
 0x2e7   : > { %p2038_p8 = scmp.ge.s32.totalorder %s1607_s30, 2  ;;  %s974_s6 = scalar_lea.sflag [#allocation4], %s973_s24 }
 0x2ec   : > { %p2037_p0 = scmp.ne.s32.totalorder %s2036_s25, 0 }
 0x2ee   : > { %p1256_p6 = pnand %p2038_p8, %p2037_p0 }
 0x2f0   : > { %1590 = dma.done.wait (!%p1256_p6), %s974_s6, 128  }
 0x2f1   : > { %1592 = vsyncadd (!%p1256_p6), %s974_s6, 4294967168  ;;  %s2039_s21 = sld [smem:[#allocation18_spill]]  ;;  %p25_p10 = scmp.ge.s32.totalorder %s1797_s17, 4  }
 0x2f2   : > { %s2040_s27 = smov %s1599_s28  ;;  %s2041_s28 = smov %s1603_s29 }
 0x2f3   : > { %s2043_s30 = smov %s1797_s17  ;;  %27 = sbr.rel (!%p25_p10) target bundleno = 12 (0xc), region = 122 }
 0x2f7   : > { %s2042_s29 = smov %s2039_s21 }
 0x2fa   :  { %979 = vsyncpa [#allocation3], 1 }
 0x2fb   :  { %981 = vsyncpa [#allocation3 + $0x1], 1 }
 0x2fc   :  { %982 = vsyncpa [#allocation6], 1 }
 0x2fd   :  { %984 = vsyncpa [#allocation6 + $0x1], 1 }
 0x2fe   :  { %985 = vsyncpa [#allocation9], 1 }
 0x2ff   :  { %986 = vsyncpa [#allocation4], 1 }
 0x300   :  { %988 = vsyncpa [#allocation4 + $0x1], 1 }

</bundles_post_ra>
